<compile_context>
chip_gen: v7x
topology: tpu7x:2x2x1
jax: 0.10.0
libtpu: 0.0.40
codegen_flags: <defaults>
</compile_context>

<pallas_src>
import jax
import jax.numpy as jnp
from jax import lax
from jax.experimental import pallas as pl
from jax.experimental.pallas import tpu as pltpu


def _round_up(v, m):
    return ((v + m - 1) // m) * m


def _posenet_loss_kernel(x_ref, y_ref, out_ref, acc_ref):
    """x_ref/y_ref: (7, TN) lane-dense tiles; acc_ref: (7, TN) VMEM partials."""
    step = pl.program_id(1)

    @pl.when(step == 0)
    def _init():
        acc_ref[...] = jnp.zeros_like(acc_ref)

    xt = x_ref[...].astype(jnp.float32)          # (7, TN)
    yt = y_ref[...].astype(jnp.float32)          # (7, TN)

    # Rows 0..2 = translation, rows 3..6 = quaternion (tiny sublane mask).
    quat_row = lax.broadcasted_iota(jnp.int32, (7, 1), 0) >= 3

    # Quaternion normalization: one rsqrt per column (EUP), pure VPU otherwise.
    sq_sum = jnp.sum(jnp.where(quat_row, xt * xt, 0.0), axis=0, keepdims=True)
    inv_norm = lax.rsqrt(jnp.maximum(sq_sum, jnp.float32(1e-24)))  # 1/max(||q||,1e-12)
    scale = jnp.where(quat_row, inv_norm, jnp.float32(1.0))        # (7, TN)

    # Zero-padded columns: x == y == 0 -> |0*scale - 0| == 0, contribute nothing.
    acc_ref[...] += jnp.abs(xt * scale - yt)

    @pl.when(step == pl.num_programs(1) - 1)
    def _finalize():
        acc = acc_ref[...]
        sum_q = jnp.sum(jnp.where(quat_row, acc, 0.0))
        sum_x = jnp.sum(acc) - sum_q
        # Partial sums for this batch slice: sublane 0 -> sum_x, sublane 1 -> sum_q.
        row_idx = lax.broadcasted_iota(jnp.int32, out_ref.shape, 1)
        out_ref[...] = jnp.where(row_idx == 0, sum_x,
                                 jnp.where(row_idx == 1, sum_q, 0.0))


def posenet_criterion_pallas(x, y, sx, sq, *, block_cols=32768, num_slices=2):
    """Pallas path. x, y: (N, 7); sx, sq: (1,) f32. Returns scalar loss."""
    n, d = x.shape
    assert d == 7 and y.shape == (n, d)

    # Lane-dense layout: batch on the 128-lane axis.
    x_t = jnp.transpose(x)            # (7, N)
    y_t = jnp.transpose(y)

    cols_per_slice = pl.cdiv(n, num_slices)
    tn = min(_round_up(block_cols, 128), _round_up(max(cols_per_slice, 1), 128))
    tiles_per_slice = pl.cdiv(cols_per_slice, tn)
    padded_n = num_slices * tiles_per_slice * tn
    if padded_n != n:
        pad = padded_n - n
        x_t = jnp.pad(x_t, ((0, 0), (0, pad)))
        y_t = jnp.pad(y_t, ((0, 0), (0, pad)))

    def in_map(c, i):
        return (0, c * tiles_per_slice + i)

    partials = pl.pallas_call(
        _posenet_loss_kernel,
        out_shape=jax.ShapeDtypeStruct((num_slices, 8, 128), jnp.float32),
        grid=(num_slices, tiles_per_slice),
        in_specs=[
            pl.BlockSpec((d, tn), in_map),                       # x tile -> VMEM
            pl.BlockSpec((d, tn), in_map),                       # y tile -> VMEM
        ],
        out_specs=pl.BlockSpec((1, 8, 128), lambda c, i: (c, 0, 0)),
        scratch_shapes=[pltpu.VMEM((d, tn), jnp.float32)],        # |diff| partials
        compiler_params=pltpu.CompilerParams(
            dimension_semantics=("parallel", "arbitrary")),
    )(x_t, y_t)

    # Tiny finalize in the wrapper (combines per-core/slice partials).
    sum_x = jnp.sum(partials[:, 0, 0])
    sum_q = jnp.sum(partials[:, 1, 0])
    l1_x = sum_x / jnp.float32(3 * n)      # mean over N*3 elements
    l1_q = sum_q / jnp.float32(4 * n)      # mean over N*4 elements
    return (jnp.exp(-sx[0]) * l1_x + sx[0]
            + jnp.exp(-sq[0]) * l1_q + sq[0])


def posenet_criterion_ref(x, y, sx, sq):
    """Pure-JAX reference (also the small-batch fast path)."""
    pred_x, pred_q = x[:, :3], x[:, 3:]
    target_x, target_q = y[:, :3], y[:, 3:]
    qn = jnp.maximum(jnp.linalg.norm(pred_q, axis=-1, keepdims=True), 1e-12)
    pred_q = pred_q / qn
    l1_x = jnp.mean(jnp.abs(pred_x - target_x))
    l1_q = jnp.mean(jnp.abs(pred_q - target_q))
    return jnp.exp(-sx[0]) * l1_x + sx[0] + jnp.exp(-sq[0]) * l1_q + sq[0]


def posenet_criterion(x, y, sx, sq, *, block_cols=32768, num_slices=2,
                      min_pallas_rows=4096):
    """Dispatcher: small batches go to plain XLA (launch overhead dominates)."""
    if x.shape[0] < min_pallas_rows:
        return posenet_criterion_ref(x, y, sx, sq)
    return posenet_criterion_pallas(x, y, sx, sq, block_cols=block_cols,
                                    num_slices=num_slices)


if __name__ == "__main__":
    # Learned log-variance parameters (module defaults sx=0, sq=0; use nonzero
    # values to exercise the exp(-s)*L + s terms).
    sx = jnp.array([-1.0], dtype=jnp.float32)
    sq = jnp.array([-3.5], dtype=jnp.float32)

    # Small deterministic inputs: batch N=300 poses (xyz + quaternion).
    key = jax.random.PRNGKey(0)
    kx, ky = jax.random.split(key)
    N = 300
    x = jax.random.normal(kx, (N, 7), dtype=jnp.float32)
    y = jax.random.normal(ky, (N, 7), dtype=jnp.float32)

    ref = posenet_criterion_ref(x, y, sx, sq)

    # Force the Pallas path with a tiny tile: covers multi-tile accumulation,
    # both batch slices ("cores") and zero-column padding (300 -> 512 cols).
    loss = posenet_criterion_pallas(x, y, sx, sq, block_cols=128, num_slices=2)
    loss = jax.block_until_ready(loss)
    assert jnp.allclose(loss, ref, rtol=1e-5, atol=1e-5), (loss, ref)

    # Default tile sizing (single tile per slice) agrees too.
    loss_def = jax.block_until_ready(posenet_criterion_pallas(x, y, sx, sq))
    assert jnp.allclose(loss_def, ref, rtol=1e-5, atol=1e-5), (loss_def, ref)

    # Dispatcher small-batch (pure-JAX) path agrees as well.
    loss_small = jax.block_until_ready(posenet_criterion(x, y, sx, sq))
    assert jnp.allclose(loss_small, ref, rtol=1e-5, atol=1e-5), (loss_small, ref)

    print("KERNEL_OK")
</pallas_src>

<mosaic_0001>
module attributes {stable_mosaic.version = 11 : i64} {
  func.func @_posenet_loss_kernel(%arg0: i32, %arg1: i32, %arg2: memref<7x128xf32, #tpu.memory_space<vmem>>, %arg3: memref<7x128xf32, #tpu.memory_space<vmem>>, %arg4: memref<1x8x128xf32, #tpu.memory_space<vmem>>, %arg5: memref<7x128xf32, #tpu.memory_space<vmem>>) attributes {dimension_semantics = [#tpu.dimension_semantics<parallel>, #tpu.dimension_semantics<arbitrary>], iteration_bounds = array<i64: 2, 2>, scalar_prefetch = 0 : i64, scratch_operands = 1 : i64, tpu.core_type = #tpu.core_type<tc>, window_params = [{transform_indices = @transform_0, window_bounds = array<i64: 7, 128>}, {transform_indices = @transform_1, window_bounds = array<i64: 7, 128>}, {transform_indices = @transform_2, window_bounds = array<i64: 1, 8, 128>}]} {
    %c0_i32 = arith.constant 0 : i32
    %0 = arith.cmpi eq, %arg1, %c0_i32 : i32
    %1 = arith.extui %0 : i1 to i32
    %c0_i32_0 = arith.constant 0 : i32
    %2 = arith.cmpi ne, %1, %c0_i32_0 : i32
    scf.if %2 {
      %cst_12 = arith.constant 0.000000e+00 : f32
      %33 = vector.broadcast %cst_12 : f32 to vector<7x128xf32>
      %c0_13 = arith.constant 0 : index
      %c0_14 = arith.constant 0 : index
      %34 = vector.load %arg5[%c0_13, %c0_14] : memref<7x128xf32, #tpu.memory_space<vmem>>, vector<7x128xf32>
      tpu.vector_store %arg5[%c0_13, %c0_14], %33 {strides = array<i32>} : memref<7x128xf32, #tpu.memory_space<vmem>>, vector<7x128xf32>,
    } else {
    }
    %c0 = arith.constant 0 : index
    %c0_1 = arith.constant 0 : index
    %3 = vector.load %arg2[%c0, %c0_1] : memref<7x128xf32, #tpu.memory_space<vmem>>, vector<7x128xf32>
    %c0_2 = arith.constant 0 : index
    %c0_3 = arith.constant 0 : index
    %4 = vector.load %arg3[%c0_2, %c0_3] : memref<7x128xf32, #tpu.memory_space<vmem>>, vector<7x128xf32>
    %5 = tpu.iota {dimensions = array<i32: 0>} : vector<7x1xi32>
    %c3_i32 = arith.constant 3 : i32
    %6 = vector.broadcast %c3_i32 : i32 to vector<7x1xi32>
    %7 = arith.cmpi sge, %5, %6 : vector<7x1xi32>
    %8 = arith.mulf %3, %3 : vector<7x128xf32>
    %cst = arith.constant 0.000000e+00 : f32
    %9 = vector.shape_cast %7 : vector<7x1xi1> to vector<7x1xi1>
    %10 = vector.broadcast %9 : vector<7x1xi1> to vector<7x128xi1>
    %11 = vector.broadcast %cst : f32 to vector<7x128xf32>
    %12 = arith.select %10, %8, %11 : vector<7x128xi1>, vector<7x128xf32>
    %cst_4 = arith.constant dense<0.000000e+00> : vector<128xf32>
    %13 = vector.multi_reduction <add>, %12, %cst_4 [0] : vector<7x128xf32> to vector<128xf32>
    %14 = vector.shape_cast %13 : vector<128xf32> to vector<1x128xf32>
    %cst_5 = arith.constant 1.000000e-24 : f32
    %15 = vector.broadcast %cst_5 : f32 to vector<1x128xf32>
    %16 = arith.maximumf %14, %15 : vector<1x128xf32>
    %17 = math.rsqrt %16 : vector<1x128xf32>
    %cst_6 = arith.constant 1.000000e+00 : f32
    %18 = vector.shape_cast %7 : vector<7x1xi1> to vector<7x1xi1>
    %19 = vector.broadcast %18 : vector<7x1xi1> to vector<7x128xi1>
    %20 = vector.shape_cast %17 : vector<1x128xf32> to vector<1x128xf32>
    %21 = vector.broadcast %20 : vector<1x128xf32> to vector<7x128xf32>
    %22 = vector.broadcast %cst_6 : f32 to vector<7x128xf32>
    %23 = arith.select %19, %21, %22 : vector<7x128xi1>, vector<7x128xf32>
    %c0_7 = arith.constant 0 : index
    %c0_8 = arith.constant 0 : index
    %24 = vector.load %arg5[%c0_7, %c0_8] : memref<7x128xf32, #tpu.memory_space<vmem>>, vector<7x128xf32>
    %25 = arith.mulf %3, %23 : vector<7x128xf32>
    %26 = arith.subf %25, %4 : vector<7x128xf32>
    %27 = math.absf %26 : vector<7x128xf32>
    %28 = arith.addf %24, %27 : vector<7x128xf32>
    %c0_9 = arith.constant 0 : index
    %c0_10 = arith.constant 0 : index
    %29 = vector.load %arg5[%c0_9, %c0_10] : memref<7x128xf32, #tpu.memory_space<vmem>>, vector<7x128xf32>
    tpu.vector_store %arg5[%c0_9, %c0_10], %28 {strides = array<i32>} : memref<7x128xf32, #tpu.memory_space<vmem>>, vector<7x128xf32>,
    %c1_i32 = arith.constant 1 : i32
    %30 = arith.cmpi eq, %arg1, %c1_i32 : i32
    %31 = arith.extui %30 : i1 to i32
    %c0_i32_11 = arith.constant 0 : i32
    %32 = arith.cmpi ne, %31, %c0_i32_11 : i32
    scf.if %32 {
      %c0_12 = arith.constant 0 : index
      %c0_13 = arith.constant 0 : index
      %33 = vector.load %arg5[%c0_12, %c0_13] : memref<7x128xf32, #tpu.memory_space<vmem>>, vector<7x128xf32>
      %cst_14 = arith.constant 0.000000e+00 : f32
      %34 = vector.shape_cast %7 : vector<7x1xi1> to vector<7x1xi1>
      %35 = vector.broadcast %34 : vector<7x1xi1> to vector<7x128xi1>
      %36 = vector.broadcast %cst_14 : f32 to vector<7x128xf32>
      %37 = arith.select %35, %33, %36 : vector<7x128xi1>, vector<7x128xf32>
      %38 = vector.shape_cast %37 : vector<7x128xf32> to vector<1x7x128xf32>
      %cst_15 = arith.constant dense<0.000000e+00> : vector<1xf32>
      %39 = vector.multi_reduction <add>, %38, %cst_15 [1, 2] : vector<1x7x128xf32> to vector<1xf32>
      %40 = vector.shape_cast %39 : vector<1xf32> to vector<1x1x1xf32>
      %41 = vector.extract %40[0, 0, 0] : f32 from vector<1x1x1xf32>
      %42 = vector.shape_cast %33 : vector<7x128xf32> to vector<1x7x128xf32>
      %cst_16 = arith.constant dense<0.000000e+00> : vector<1xf32>
      %43 = vector.multi_reduction <add>, %42, %cst_16 [1, 2] : vector<1x7x128xf32> to vector<1xf32>
      %44 = vector.shape_cast %43 : vector<1xf32> to vector<1x1x1xf32>
      %45 = vector.extract %44[0, 0, 0] : f32 from vector<1x1x1xf32>
      %46 = arith.subf %45, %41 : f32
      %47 = tpu.iota {dimensions = array<i32: 1>} : vector<1x8x128xi32>
      %c0_i32_17 = arith.constant 0 : i32
      %48 = vector.broadcast %c0_i32_17 : i32 to vector<1x8x128xi32>
      %49 = arith.cmpi eq, %47, %48 : vector<1x8x128xi32>
      %c1_i32_18 = arith.constant 1 : i32
      %50 = vector.broadcast %c1_i32_18 : i32 to vector<1x8x128xi32>
      %51 = arith.cmpi eq, %47, %50 : vector<1x8x128xi32>
      %cst_19 = arith.constant 0.000000e+00 : f32
      %52 = vector.broadcast %41 : f32 to vector<1x8x128xf32>
      %53 = vector.broadcast %cst_19 : f32 to vector<1x8x128xf32>
      %54 = arith.select %51, %52, %53 : vector<1x8x128xi1>, vector<1x8x128xf32>
      %55 = vector.broadcast %46 : f32 to vector<1x8x128xf32>
      %56 = arith.select %49, %55, %54 : vector<1x8x128xi1>, vector<1x8x128xf32>
      %c0_20 = arith.constant 0 : index
      %c0_21 = arith.constant 0 : index
      %c0_22 = arith.constant 0 : index
      %57 = vector.load %arg4[%c0_20, %c0_21, %c0_22] : memref<1x8x128xf32, #tpu.memory_space<vmem>>, vector<1x8x128xf32>
      tpu.vector_store %arg4[%c0_20, %c0_21, %c0_22], %56 {strides = array<i32>} : memref<1x8x128xf32, #tpu.memory_space<vmem>>, vector<1x8x128xf32>,
    } else {
    }
    return
  }
  func.func @transform_0(%arg0: i32, %arg1: i32) -> (i32, i32) {
    %c2_i32 = arith.constant 2 : i32
    %0 = arith.muli %arg0, %c2_i32 : i32
    %1 = arith.addi %0, %arg1 : i32
    %c0_i32 = arith.constant 0 : i32
    %c0_i32_0 = arith.constant 0 : i32
    return %c0_i32, %1 : i32, i32
  }
  func.func @transform_1(%arg0: i32, %arg1: i32) -> (i32, i32) {
    %c2_i32 = arith.constant 2 : i32
    %0 = arith.muli %arg0, %c2_i32 : i32
    %1 = arith.addi %0, %arg1 : i32
    %c0_i32 = arith.constant 0 : i32
    %c0_i32_0 = arith.constant 0 : i32
    return %c0_i32, %1 : i32, i32
  }
  func.func @transform_2(%arg0: i32, %arg1: i32) -> (i32, i32, i32) {
    %c0_i32 = arith.constant 0 : i32
    %c0_i32_0 = arith.constant 0 : i32
    %c0_i32_1 = arith.constant 0 : i32
    return %arg0, %c0_i32, %c0_i32_0 : i32, i32, i32
  }
}

</mosaic_0001>

<bundles_post_ra>
// kernel: tpu_custom_call.1
= control target key start
LH: loop header
LB: loop body
LE: loop exit
PB: predicated region body
PF: predicated region fallthrough
CT: control target
= control target key end

     0   :  { %s1040_s0 = inlined_call_operand.hbm [shape: f32[7,512], index: 0, kind: input, shape index: {}]   ;;  %s1041_s1 = inlined_call_operand.hbm [shape: f32[7,512], index: 1, kind: input, shape index: {}]   ;;  %s1042_s2 = inlined_call_operand.hbm [shape: f32[2,8,128], index: 2, kind: output, shape index: {}]  }
   0x1   :  { %1049 = sst [smem:[#allocation14_spill]] %s1040_s0 }
   0x2   :  { %7 = vsyncpa [#allocation4], 0 }
   0x3   :  { %9 = vsyncpa [#allocation4 + $0x1], 0 }
   0x4   :  { %10 = vsyncpa [#allocation7], 0 }
   0x5   :  { %12 = vsyncpa [#allocation7 + $0x1], 0 }
   0x6   :  { %13 = vsyncpa [#allocation5], 0 }
   0x7   :  { %15 = vsyncpa [#allocation5 + $0x1], 0  ;;  %s756_s9 = smov 0   ;;  %s758_s10 = smov 0  }
   0x8   :  { %s760_s11 = smov 0   ;;  %s762_s12 = smov 0  }
   0x9   :  { %s764_s13 = smov 0   ;;  %s766_s14 = smov 0  }
   0xa   :  { %s768_s15 = smov 0   ;;  %s770_s16 = smov 0  }
   0xb   :  { %s772_s17 = smov 0   ;;  %s774_s18 = smov 0  }
   0xc   :  { %s776_s19 = smov 0  }
   0xd LB: > { %s411_s20 = sadd.s32 4294967295, %s735_s19   ;;  %s412_s21 = sadd.s32 4294967294, %s735_s19   ;;  %s735_s19 = sphi %s776_s19, %s21_s19   ;;  %s731_s18 = sphi %s774_s18, %s1078_s18   ;;  %s727_s17 = sphi %s772_s17, %s1077_s17   ;;  %s723_s16 = sphi %s770_s16, %s1076_s16   ;;  %s719_s15 = sphi %s768_s15, %s1075_s15   ;;  %s715_s14 = sphi %s766_s14, %s1074_s14   ;;  %s711_s13 = sphi %s764_s13, %s1073_s13   ;;  %s707_s12 = sphi %s762_s12, %s1072_s12   ;;  %s703_s11 = sphi %s760_s11, %s1071_s11   ;;  %s699_s10 = sphi %s758_s10, %s1070_s10   ;;  %s695_s9 = sphi %s756_s9, %s1069_s9  }
   0xe   : > { %s30_s22 = sadd.s32 1, %s727_s17  ;;  %s33_s23 = sadd.s32 1, %s731_s18 }
   0xf   : > { %p31_p0 = scmp.ge.s32.totalorder %s30_s22, 2  ;;  %s413_s24 = sshll.u32 %s731_s18, 1 }
  0x10   : > { %s815_s25 = sadd.s32 %s727_s17, %s413_s24  ;;  %s44_s26 = sadd.s32 1, %s715_s14 }
  0x11   : > { %s1080_s22 = smov (%p31_p0, %s30_s22), 0  ;;  %s1082_s23 = smov (!%p31_p0, %s33_s23), %s731_s18 }
  0x12   : > { %1050 = sst [smem:[#allocation12_spill]] %s1080_s22  ;;  %p51_p1 = scmp.ne.s32.totalorder %s715_s14, %s711_s13 }
  0x13   : > { %p52_p2 = scmp.eq.s32.totalorder %s735_s19, 0  ;;  %p35_p3 = scmp.ge.s32.totalorder %s1082_s23, 2 }
  0x14   : > { %p57_p4 = scmp.ne.s32.totalorder %s711_s13, %s707_s12  ;;  %p58_p6 = scmp.eq.s32.totalorder %s411_s20, 0 }
  0x15   : > { %p825_p5 = por %p52_p2, %p51_p1  ;;  %s1084_s23 = smov (%p35_p3, %s1082_s23), 0 }
  0x16   : > { %1052 = sst [smem:[#allocation13_spill]] %s1084_s23  ;;  %p831_p7 = por %p58_p6, %p57_p4 }
  0x17   : > { %s100_s29 = sadd.s32 1, %s703_s11  ;;  %s414_s30 = sshll.u32 %s1084_s23, 1 }
  0x18   : > { %s1053_s28 = scalar_select %p831_p7, 1, 0 }
  0x19   : > { %s97_s3 = ssub.s32 %s731_s18, %s1084_s23  ;;  %s40_s4 = sadd.s32 %s414_s30, %s1080_s22 }
  0x1a   : > { %p98_p8 = scmp.eq.s32.totalorder %s97_s3, 0  ;;  %s41_s5 = ssub.s32 %s815_s25, %s40_s4 }
  0x1b   : > { %p110_p9 = scmp.ne.s32.totalorder %s703_s11, %s699_s10  ;;  %p42_p10 = scmp.eq.s32.totalorder %s41_s5, 0 }
  0x1c   : > { %p111_p11 = scmp.eq.s32.totalorder %s411_s20, 3  ;;  %p116_p13 = scmp.ne.s32.totalorder %s699_s10, %s695_s9 }
  0x1d   : > { %s844_s6 = scalar_select %p98_p8, %s703_s11, %s100_s29  }
  0x1e   : > { %s847_s7 = scalar_select %p42_p10, %s715_s14, %s44_s26  }
  0x1f   : > { %p849_p12 = por %p111_p11, %p110_p9  ;;  %p117_p0 = scmp.eq.s32.totalorder %s412_s21, 3 }
  0x20   : > { %p456_p1 = scmp.lt.s32.totalorder %s735_s19, 4  ;;  %s859_s12 = sand.u32 1, %s715_s14  }
  0x21   : > { %s1054_s8 = scalar_select %p849_p12, 1, 0 }
  0x22   : > { %p861_p2 = por %p117_p0, %p116_p13  ;;  %s1043_s24 = sshll.u32 %s859_s12, 3 }
  0x23   : > { %s1044_s26 = sshll.u32 %s815_s25, 7  ;;  %s1056_s0 = sld [smem:[#allocation14_spill]] }
  0x24   : > { %s1055_s20 = scalar_select %p861_p2, 1, 0 }
  0x25   : > { %s141_s21 = scalar_lea.vmem [#allocation3], %s1043_s24  ;;  %p878_p3 = pnand %p456_p1, %p825_p5 }
  0x26   : > { %s150_s4 = sshll.u32 %s141_s21, 4  ;;  %s138_s29 = scalar_lea.sflag [#allocation4], %s859_s12  ;;  %s882_s4 = int_to_ptr.vmem [resolvable:$true] %s150_s4 }
  0x27   : > { %p551_p9 = pneg %p878_p3 }
  0x29   : > { %s872_s3 = scalar_lea.hbm %s1056_s0, %s1044_s26  ;;  %s554_s24 = scalar_lea.hbm %s1056_s0, 512 }
  0x2a   : > { %s549_s30 = scalar_lea.hbm %s872_s3, 128  ;;  %p555_p5 = scmp.lt.u32.totalorder %s872_s3, %s1056_s0 }
  0x2b   : > { %p550_p8 = scmp.ne.s32.totalorder %s872_s3, %s549_s30  ;;  %p556_p13 = scmp.lt.u32.totalorder %s554_s24, %s549_s30 }
  0x2c   : > { %p558_p1 = scmp.lt.u32.totalorder %s549_s30, %s872_s3 }
  0x2d   : > { %p552_p10 = pnand %p551_p9, %p550_p8  ;;  %p557_p0 = por %p556_p13, %p555_p5 }
  0x2f   : > { %p553_p11 = pneg %p552_p10  ;;  %p559_p4 = por %p558_p1, %p557_p0 }
  0x31   : > { %p560_p6 = pnand %p559_p4, %p553_p11 }
  0x33   : > { %563 = shalt.err (!%p560_p6)
}
  0x34   : > { %s564_s22 = scalar_lea.vmem %s882_s4, 128  ;;  %s737_s27 = smov [#allocation3]  }
  0x35   : > { %p565_p8 = scmp.ne.s32.totalorder %s882_s4, %s564_s22  ;;  %s569_s21 = sshll.u32 %s737_s27, 4  ;;  %s570_s21 = int_to_ptr.vmem [resolvable:$false] %s569_s21 }
  0x36   : > { %s571_s23 = scalar_lea.vmem %s570_s21, 256  ;;  %p572_p12 = scmp.lt.s32.totalorder %s882_s4, %s570_s21 }
  0x37   : > { %p567_p10 = pnand %p565_p8, %p551_p9  ;;  %p573_p5 = scmp.lt.s32.totalorder %s571_s23, %s564_s22 }
  0x39   : > { %p568_p2 = pneg %p567_p10  ;;  %p574_p13 = por %p573_p5, %p572_p12 }
  0x3b   : > { %p575_p0 = pnand %p574_p13, %p568_p2 }
  0x3d   : > { %578 = shalt.err (!%p575_p0)
}
  0x3e   : > { %448 = dma.hbm_to_vmem [thread:$0]  (!%p878_p3), %s872_s3, 128, %s882_s4, %s138_s29  }
  0x3f   : > { %p1058_p4 = scmp.lt.s32.totalorder %s735_s19, 5  ;;  %p1059_p6 = scmp.ge.s32.totalorder %s735_s19, 1 }
  0x40   : > { %s1061_s22 = sshll.u32 %s815_s25, 7  ;;  %s1062_s21 = sshll.u32 %s859_s12, 3 }
  0x41   : > { %p916_p11 = pnand %p1059_p6, %p1058_p4  ;;  %s925_s27 = scalar_lea.hbm %s1041_s1, %s1061_s22 }
  0x42   : > { %s161_s23 = scalar_lea.vmem [#allocation6], %s1062_s21  ;;  %s158_s3 = scalar_lea.sflag [#allocation7], %s859_s12 }
  0x43   : > { %s1060_s24 = scalar_select %p916_p11, 1, 0 }
  0x44   : > { %s170_s0 = sshll.u32 %s161_s23, 4  ;;  %s579_s4 = scalar_lea.hbm %s925_s27, 128  ;;  %s171_s0 = int_to_ptr.vmem [resolvable:$true] %s170_s0 }
  0x45   : > { %p580_p12 = scmp.ne.s32.totalorder %s925_s27, %s579_s4  ;;  %s584_s22 = scalar_lea.hbm %s1041_s1, 512 }
  0x46   : > { %p585_p8 = scmp.lt.u32.totalorder %s925_s27, %s1041_s1  ;;  %p586_p10 = scmp.lt.u32.totalorder %s584_s22, %s579_s4 }
  0x47   : > { %p582_p2 = pnand %p580_p12, %p551_p9  ;;  %p588_p13 = scmp.lt.u32.totalorder %s579_s4, %s925_s27 }
  0x48   : > { %p587_p5 = por %p586_p10, %p585_p8 }
  0x49   : > { %p583_p1 = pneg %p582_p2 }
  0x4a   : > { %p589_p0 = por %p588_p13, %p587_p5 }
  0x4c   : > { %p590_p4 = pnand %p589_p0, %p583_p1 }
  0x4e   : > { %593 = shalt.err (!%p590_p4)
}
  0x4f   : > { %s594_s12 = scalar_lea.vmem %s171_s0, 128  ;;  %s738_s21 = smov [#allocation6]  }
  0x50   : > { %p595_p6 = scmp.ne.s32.totalorder %s171_s0, %s594_s12  ;;  %s599_s23 = sshll.u32 %s738_s21, 4  ;;  %s600_s23 = int_to_ptr.vmem [resolvable:$false] %s599_s23 }
  0x51   : > { %s601_s25 = scalar_lea.vmem %s600_s23, 256  ;;  %p602_p7 = scmp.lt.s32.totalorder %s171_s0, %s600_s23 }
  0x52   : > { %p597_p12 = pnand %p595_p6, %p551_p9  ;;  %p603_p11 = scmp.lt.s32.totalorder %s601_s25, %s594_s12 }
  0x54   : > { %p598_p2 = pneg %p597_p12  ;;  %p604_p8 = por %p603_p11, %p602_p7 }
  0x56   : > { %p605_p10 = pnand %p604_p8, %p598_p2 }
  0x58   : > { %608 = shalt.err (!%p605_p10)
}
  0x59   : > { %451 = dma.hbm_to_vmem [thread:$0]  (!%p878_p3), %s925_s27, 128, %s171_s0, %s158_s3  }
  0x5a   : > { %p1063_p1 = scmp.ne.s32.totalorder %s1060_s24, 0 }
  0x5b   : > { %s181_s4 = sand.u32 (!%p1063_p1), 1, %s711_s13   ;;  %p1064_p9 = scmp.ne.s32.totalorder (!%p1063_p1), %s1053_s28, 0 }
  0x5c   : > { %179 = sbr.rel (%p1063_p1) target bundleno = 400 (0x190), region = 28  ;;  %s426_s29 = sshll.u32 (!%p1063_p1), %s181_s4, 3 }
  0x5d   : > { %s182_s22 = scalar_lea.sflag (!%p1063_p1), [#allocation4], %s181_s4  ;;  %s185_s26 = scalar_lea.vmem (!%p1063_p1), [#allocation3], %s426_s29 }
  0x63   : > { %682 = dma.done.wait (%p1064_p9), %s182_s22, 128  }
  0x64   : > { %684 = vsyncadd (%p1064_p9), %s182_s22, 4294967168  ;;  %s191_s30 = scalar_lea.sflag [#allocation7], %s181_s4  ;;  %s194_s12 = scalar_lea.vmem [#allocation6], %s426_s29 }
  0x65   : > { %686 = dma.done.wait (%p1064_p9), %s191_s30, 128  }
  0x66   : > { %688 = vsyncadd (%p1064_p9), %s191_s30, 4294967168  ;;  %s217_s0 = sand.u32 1, %s699_s10   ;;  %p429_p7 = scmp.ne.s32.totalorder %s719_s15, 0 }
  0x67   : > { %s963_s5 = sshll.u32 %s217_s0, 3  ;;  %v739_v0 = vmov (!%p429_p7), 0.0  }
  0x68   : > { %s219_s24 = scalar_lea.vmem [#allocation8], %s963_s5  ;;  %227 = sbr.rel (%p429_p7) target bundleno = 111 (0x6f), region = 40  ;;  %228 = vst [vmem:[#allocation2] sm:$0x7f] (!%p429_p7), %v739_v0 }
  0x6f PF: > { %v229_v1 = vld [vmem:[%s185_s26] sm:$0x7f]  ;;  %v231_v2 = vlaneseq  ;;  %vm238_vm0 = vcmask 1046528   ;;  %v230_v15 = vld [vmem:[%s194_s12] sm:$0x7f]  ;;  %p430_p3 = scmp.ne.s32.totalorder %s719_s15, 1 }
  0x70   : > { %v234_v3 = vmul.f32 %v229_v1, %v229_v1  ;;  %v249_v19 = vld [vmem:[#allocation2] sm:$0x7f] }
  0x71   : > { %v232_v4 = vshrl.u32 %v231_v2, 7 }
  0x73   : > { %vm233_vm1 = vcmp.ge.s32.totalorder %v232_v4, 3  ;;  %vm283_vm2 = vcmp.eq.s32.totalorder (!%p430_p3), %v232_v4, 1  ;;  %vm282_vm3 = vcmp.eq.s32.totalorder (!%p430_p3), %v232_v4, 0 }
  0x74   : > { %v237_v5 = vsel %vm233_vm1, %v234_v3, 0.0 }
  0x75   : > { %v239_v6 = vsel %vm238_vm0, %v237_v5, 0.0 }
  0x76   : > { %v240_v7 = vrot.slane %v239_v6, 4 }
  0x78   : > { %v241_v8 = vadd.f32 %v240_v7, %v239_v6 }
  0x7a   : > { %v242_v9 = vrot.slane %v241_v8, 2 }
  0x7c   : > { %v243_v10 = vadd.f32 %v242_v9, %v241_v8 }
  0x7e   : > { %v244_v11 = vrot.slane %v243_v10, 1 }
  0x80   : > { %v245_v12 = vadd.f32 %v244_v11, %v243_v10 }
  0x82   : > { %v246_v13 = vmax.f32 %v245_v12, 1e-24 }
  0x84   : > { %547 = vrsqrt.f32 %v246_v13 }
  0x8e   : > { %v548_v14 = vpop.eup %547 }
  0x8f   : > { %v248_v16 = vsel %vm233_vm1, %v548_v14, 1.0 }
  0x90   : > { %v250_v17 = vmul.f32 %v248_v16, %v229_v1 }
  0x92   : > { %v251_v18 = vsub.f32 %v250_v17, %v230_v15  ;;  %258 = sbr.rel (%p430_p3) target bundleno = 375 (0x177), region = 44 }
  0x94   : > { %v252_v20 = vand.u32 2147483647, %v251_v18 }
  0x96   : > { %v253_v21 = vadd.f32 %v252_v20, %v249_v19 }
  0x98   : > { %254 = vst [vmem:[#allocation2] sm:$0x7f] %v253_v21 }
  0x9f   : > { %v259_v22 = vld [vmem:[#allocation2] sm:$0x7f] }
  0xa0   : > { %v260_v23 = vsel %vm233_vm1, %v259_v22, 0.0  ;;  %v271_v25 = vsel %vm238_vm0, %v259_v22, 0.0 }
  0xa1   : > { %v261_v24 = vsel %vm238_vm0, %v260_v23, 0.0 }
  0xa2   : > { %262 = vadd.xlane.f32.xlu0 %v261_v24 }
  0xa6   : > { %272 = vadd.xlane.f32.xlu0 %v271_v25 }
 0x12f   : > { %v263_v26 = vpop.xlane.xlu0 %262 }
 0x130   : > { %v264_v27 = vrot.slane %v263_v26, 4 }
 0x132   : > { %v265_v28 = vadd.f32 %v264_v27, %v263_v26 }
 0x133   : > { %v273_v29 = vpop.xlane.xlu0 %272 }
 0x134   : > { %v266_v30 = vrot.slane %v265_v28, 2  ;;  %v274_v31 = vrot.slane %v273_v29, 4 }
 0x136   : > { %v275_v32 = vadd.f32 %v274_v31, %v273_v29  ;;  %v267_v33 = vadd.f32 %v266_v30, %v265_v28 }
 0x138   : > { %v276_v34 = vrot.slane %v275_v32, 2  ;;  %v268_v35 = vrot.slane %v267_v33, 1 }
 0x13a   : > { %v277_v36 = vadd.f32 %v276_v34, %v275_v32  ;;  %v269_v37 = vadd.f32 %v268_v35, %v267_v33 }
 0x13c   : > { %435 = vpush %v269_v37  ;;  %v278_v38 = vrot.slane %v277_v36, 1 }
 0x13e   : > { %v279_v39 = vadd.f32 %v278_v38, %v277_v36 }
 0x140   : > { %437 = vpush %v279_v39 }
 0x16d   : > { %s436_s15 = spop %435 }
 0x16e   : > { %v284_v40 = vstv %s436_s15 }
 0x16f   : > { %v285_v41 = vsel %vm283_vm2, %v284_v40, 0.0 }
 0x171   : > { %s438_s28 = spop %437 }
 0x172   : > { %s281_s27 = ssub.f32 %s438_s28, %s436_s15 }
 0x174   : > { %v286_v42 = vstv %s281_s27 }
 0x175   : > { %v287_v43 = vsel %vm282_vm3, %v286_v42, %v285_v41 }
 0x176   : > { %288 = vst [vmem:[%s219_s24] sm:$0xff] %v287_v43 }
 0x177 PF: > { %s432_s3 = sshll.u32 %s723_s16, 7  ;;  %s303_s4 = sshll.u32 %s219_s24, 4  ;;  %s304_s4 = int_to_ptr.vmem [resolvable:$true] %s303_s4 }
 0x178   : > { %s980_s25 = scalar_lea.hbm %s1042_s2, %s432_s3  ;;  %s290_s29 = scalar_lea.sflag [#allocation5], %s217_s0 }
 0x179   : > { %s609_s22 = scalar_lea.vmem %s304_s4, 128  ;;  %p1065_p5 = scmp.ne.s32.totalorder %s1054_s8, 0 }
 0x17a   : > { %p610_p11 = scmp.ne.s32.totalorder %s304_s4, %s609_s22  ;;  %s740_s26 = smov [#allocation8]  }
 0x17b   : > { %s613_s30 = sshll.u32 %s740_s26, 4  ;;  %s614_s30 = int_to_ptr.vmem [resolvable:$false] %s613_s30 }
 0x17c   : > { %p611_p13 = pnand %p610_p11, %p1065_p5  ;;  %s615_s12 = scalar_lea.vmem %s614_s30, 256 }
 0x17d   : > { %p616_p4 = scmp.lt.s32.totalorder %s304_s4, %s614_s30  ;;  %p617_p6 = scmp.lt.s32.totalorder %s615_s12, %s609_s22 }
 0x17e   : > { %p612_p0 = pneg %p611_p13 }
 0x17f   : > { %p618_p12 = por %p617_p6, %p616_p4 }
 0x181   : > { %p619_p2 = pnand %p618_p12, %p612_p0 }
 0x183   : > { %622 = shalt.err (!%p619_p2)
}
 0x184   : > { %s623_s16 = scalar_lea.hbm %s980_s25, 128  ;;  %s627_s24 = scalar_lea.hbm %s1042_s2, 256 }
 0x185   : > { %p624_p8 = scmp.ne.s32.totalorder %s980_s25, %s623_s16  ;;  %p628_p9 = scmp.lt.u32.totalorder %s980_s25, %s1042_s2 }
 0x186   : > { %p629_p7 = scmp.lt.u32.totalorder %s627_s24, %s623_s16  ;;  %p631_p11 = scmp.lt.u32.totalorder %s623_s16, %s980_s25 }
 0x187   : > { %p625_p10 = pnand %p624_p8, %p1065_p5 }
 0x188   : > { %p630_p3 = por %p629_p7, %p628_p9 }
 0x189   : > { %p626_p1 = pneg %p625_p10 }
 0x18a   : > { %p632_p13 = por %p631_p11, %p630_p3 }
 0x18c   : > { %p633_p0 = pnand %p632_p13, %p626_p1 }
 0x18e   : > { %636 = shalt.err (!%p633_p0)
}
 0x18f   : > { %443 = dma.vmem_to_hbm [thread:$0]  (%p1065_p5), %s304_s4, 128, %s980_s25, %s290_s29  }
 0x190 PF: > { %p457_p4 = scmp.ge.s32.totalorder %s735_s19, 2  ;;  %s315_s27 = sand.u32 1, %s695_s9  }
 0x191   : > { %p1066_p6 = scmp.ne.s32.totalorder %s1055_s20, 0  ;;  %s316_s3 = scalar_lea.sflag [#allocation5], %s315_s27 }
 0x193   : > { %p453_p12 = pnand %p457_p4, %p1066_p6 }
 0x195   : > { %690 = dma.done.wait (!%p453_p12), %s316_s3, 128  }
 0x196   : > { %692 = vsyncadd (!%p453_p12), %s316_s3, 4294967168  ;;  %s21_s19 = sadd.s32 1, %s735_s19   ;;  %s1067_s8 = sld [smem:[#allocation12_spill]] }
 0x197   : > { %p18_p2 = scmp.ge.s32.totalorder %s21_s19, 6   ;;  %s1068_s21 = sld [smem:[#allocation13_spill]] }
 0x198   : > { %s1069_s9 = smov %s699_s10  ;;  %s1070_s10 = smov %s703_s11 }
 0x199   : > { %s1071_s11 = smov %s844_s6  ;;  %s1072_s12 = smov %s711_s13 }
 0x19a   : > { %s1073_s13 = smov %s715_s14  ;;  %s1074_s14 = smov %s847_s7 }
 0x19b   : > { %s1075_s15 = smov %s727_s17  ;;  %s1076_s16 = smov %s731_s18 }
 0x19c   : > { %s1077_s17 = smov %s1067_s8  ;;  %20 = sbr.rel (!%p18_p2) target bundleno = 13 (0xd), region = 94 }
 0x19d   : > { %s1078_s18 = smov %s1068_s21 }
 0x1a3   :  { %321 = vsyncpa [#allocation4], 1 }
 0x1a4   :  { %323 = vsyncpa [#allocation4 + $0x1], 1 }
 0x1a5   :  { %324 = vsyncpa [#allocation7], 1 }
 0x1a6   :  { %326 = vsyncpa [#allocation7 + $0x1], 1 }
 0x1a7   :  { %327 = vsyncpa [#allocation5], 1 }
 0x1a8   :  { %329 = vsyncpa [#allocation5 + $0x1], 1 }

</bundles_post_ra>
